<compile_context>
chip_gen: v7x
topology: tpu7x:2x2x1
jax: 0.10.0
libtpu: 0.0.40
codegen_flags: <defaults>
</compile_context>

<pallas_src>
import math

import jax
import jax.numpy as jnp
from jax.experimental import pallas as pl
from jax.experimental.pallas import tpu as pltpu


def _timeblock_kernel(x_ref, w_ref, b_ref, o_ref):
    """Fused TimeBlock kernel.

    x_ref: (R*T, Cin)        R independent (batch, node) rows, time flattened into rows.
    w_ref: (K, Cin, 2*Cout)  [w1 + w3 | w2] weights concatenated on output channels.
    b_ref: (1, 2*Cout)       [b1 + b3 | b2] biases (f32).
    o_ref: (R, T_out, Cout)  T_out = T - K + 1.
    """
    R, T_out, Cout = o_ref.shape
    K = w_ref.shape[0]
    C2 = w_ref.shape[2]                                   # 2 * Cout (one lane tile)
    T = x_ref.shape[0] // R

    x2 = x_ref[...]                                       # (R*T, Cin), single load
    acc = jnp.zeros((R, T_out, C2), jnp.float32)          # 128-lane f32 accumulator
    for dk in range(K):                                   # static unroll over temporal taps
        # One MXU pass per tap over all rows/timesteps at once: (R*T, Cin) @ (Cin, 2*Cout).
        y = jnp.dot(x2, w_ref[dk], preferred_element_type=jnp.float32)
        y3 = y.reshape(R, T, C2)                          # aligned split (T % 8 == 0)
        acc = acc + y3[:, dk:dk + T_out, :]               # shifted tap accumulation
    acc = acc + b_ref[...]                                # single bias add on fused acc

    ca = acc[:, :, 0:Cout]                                # conv1 + conv3 (weight-fused)
    cb = acc[:, :, Cout:2 * Cout]                         # conv2 (sigmoid gate), EUP
    o_ref[...] = jnp.maximum(ca + jax.nn.sigmoid(cb), 0.0).astype(o_ref.dtype)


def _choose_rows_per_step(rows, T, target_m):
    """Largest divisor R of `rows` with R*T <= target_m; prefer >= 2 grid steps."""
    best = 1
    for r in range(1, rows + 1):
        if rows % r == 0 and r * T <= target_m:
            best = r
    grid = rows // best
    if grid < 2 and rows % 2 == 0 and rows >= 2:
        best = rows // 2                                  # give both megacore TCs work
        grid = 2
    return best, grid


def timeblock_forward(x, w1, w2, w3, b1, b2, b3, *,
                      matmul_dtype=None, target_rows_per_step=1024):
    """TimeBlock forward. x: (B, N, T, Cin) -> (B, N, T-K+1, Cout).

    Weights w*: (K, Cin, Cout) (== PyTorch conv weight[o, i, 0, k] transposed to [k, i, o]).
    matmul_dtype: optionally cast MXU operands (e.g. jnp.bfloat16 on v6e/v7x);
                  accumulation and the elementwise epilogue stay in f32.
    """
    B, N, T, Cin = x.shape
    K, _, Cout = w1.shape
    T_out = T - (K - 1)
    assert T % 8 == 0, "T must be a multiple of 8 for the aligned in-kernel reshape"

    rows = B * N
    R, grid = _choose_rows_per_step(rows, T, target_rows_per_step)
    C2 = 2 * Cout

    # Linearity fusion: conv1 + conv3 share the input, so sum their weights/biases.
    # Then concat with the gate conv along output channels -> (K, Cin, 2*Cout).
    w_cat = jnp.concatenate([w1 + w3, w2], axis=-1)
    b_cat = jnp.concatenate([b1 + b3, b2], axis=-1).reshape(1, C2).astype(jnp.float32)

    x_flat = x.reshape(rows * T, Cin)                     # free reshape in HBM
    if matmul_dtype is not None:
        x_flat = x_flat.astype(matmul_dtype)
        w_cat = w_cat.astype(matmul_dtype)

    flops = 2 * rows * T * Cin * C2 * K
    transcendentals = rows * T_out * Cout                 # sigmoid
    bytes_accessed = (x_flat.size * x_flat.dtype.itemsize
                      + w_cat.size * w_cat.dtype.itemsize
                      + b_cat.size * 4
                      + rows * T_out * Cout * 4)

    out = pl.pallas_call(
        _timeblock_kernel,
        out_shape=jax.ShapeDtypeStruct((rows, T_out, Cout), jnp.float32),
        grid=(grid,),
        in_specs=[
            pl.BlockSpec((R * T, Cin), lambda g: (g, 0)),        # pipelined input tiles
            pl.BlockSpec((K, Cin, C2), lambda g: (0, 0, 0)),     # resident fused weights
            pl.BlockSpec((1, C2), lambda g: (0, 0)),             # resident fused bias
        ],
        out_specs=pl.BlockSpec((R, T_out, Cout), lambda g: (g, 0, 0)),
        compiler_params=pltpu.CompilerParams(dimension_semantics=("parallel",)),
        cost_estimate=pl.CostEstimate(flops=flops,
                                      transcendentals=transcendentals,
                                      bytes_accessed=bytes_accessed),
    )(x_flat, w_cat, b_cat)
    return out.reshape(B, N, T_out, Cout)


# ----------------------------------------------------------------------------
# Plain-JAX reference for correctness checking (three separate convs, like PyTorch).
# ----------------------------------------------------------------------------
def timeblock_reference(x, w1, w2, w3, b1, b2, b3):
    K = w1.shape[0]
    T_out = x.shape[2] - (K - 1)

    def conv(w, b):
        acc = 0.0
        for dk in range(K):
            acc = acc + jnp.einsum(
                "bnti,io->bnto", x[:, :, dk:dk + T_out, :], w[dk],
                precision=jax.lax.Precision.HIGHEST)
        return acc + b

    return jnp.maximum(
        conv(w1, b1) + jax.nn.sigmoid(conv(w2, b2)) + conv(w3, b3), 0.0)


if __name__ == "__main__":
    key = jax.random.PRNGKey(0)
    B, N, T, Cin, Cout, K = 2, 8, 16, 64, 64, 3

    kx, kw = jax.random.split(key)
    x = jax.random.normal(kx, (B, N, T, Cin), dtype=jnp.float32)

    # PyTorch Conv2d default init: uniform(+-1/sqrt(fan_in)), fan_in = Cin * 1 * K.
    bound = 1.0 / math.sqrt(Cin * K)
    ks = jax.random.split(kw, 6)
    w1, w2, w3 = (jax.random.uniform(k, (K, Cin, Cout), jnp.float32, -bound, bound)
                  for k in ks[:3])
    b1, b2, b3 = (jax.random.uniform(k, (Cout,), jnp.float32, -bound, bound)
                  for k in ks[3:])

    ref = timeblock_reference(x, w1, w2, w3, b1, b2, b3)

    # f32 path (matches PyTorch forward semantics).
    out = jax.block_until_ready(timeblock_forward(x, w1, w2, w3, b1, b2, b3))
    assert out.shape == (B, N, T - K + 1, Cout), out.shape
    assert jnp.all(jnp.isfinite(out))
    assert jnp.allclose(out, ref, atol=5e-3, rtol=5e-3), \
        float(jnp.max(jnp.abs(out - ref)))

    # bf16 MXU-operand path (recommended on v6e/v7x); f32 accumulation + f32 epilogue.
    out_bf16 = jax.block_until_ready(
        timeblock_forward(x, w1, w2, w3, b1, b2, b3, matmul_dtype=jnp.bfloat16))
    assert jnp.allclose(out_bf16, ref, atol=5e-2, rtol=5e-2)

    print("KERNEL_OK")
</pallas_src>

<mosaic_0001>
module attributes {stable_mosaic.version = 11 : i64} {
  func.func @_timeblock_kernel(%arg0: i32, %arg1: memref<128x64xf32, #tpu.memory_space<vmem>>, %arg2: memref<3x64x128xf32, #tpu.memory_space<vmem>>, %arg3: memref<1x128xf32, #tpu.memory_space<vmem>>, %arg4: memref<8x14x64xf32, #tpu.memory_space<vmem>>) attributes {dimension_semantics = [#tpu.dimension_semantics<parallel>], iteration_bounds = array<i64: 2>, scalar_prefetch = 0 : i64, scratch_operands = 0 : i64, tpu.core_type = #tpu.core_type<tc>, window_params = [{transform_indices = @transform_0, window_bounds = array<i64: 128, 64>}, {pipeline_mode = #tpu.pipeline_mode<synchronous>, transform_indices = @transform_1, window_bounds = array<i64: 3, 64, 128>}, {pipeline_mode = #tpu.pipeline_mode<synchronous>, transform_indices = @transform_2, window_bounds = array<i64: 1, 128>}, {transform_indices = @transform_3, window_bounds = array<i64: 8, 14, 64>}]} {
    %c0 = arith.constant 0 : index
    %c0_0 = arith.constant 0 : index
    %0 = vector.load %arg1[%c0, %c0_0] : memref<128x64xf32, #tpu.memory_space<vmem>>, vector<128x64xf32>
    %cst = arith.constant 0.000000e+00 : f32
    %1 = vector.broadcast %cst : f32 to vector<8x14x128xf32>
    %c0_1 = arith.constant 0 : index
    %c0_2 = arith.constant 0 : index
    %c0_3 = arith.constant 0 : index
    %2 = vector.load %arg2[%c0_1, %c0_2, %c0_3] : memref<3x64x128xf32, #tpu.memory_space<vmem>>, vector<1x64x128xf32>
    %3 = vector.shape_cast %2 : vector<1x64x128xf32> to vector<64x128xf32>
    %cst_4 = arith.constant dense<0.000000e+00> : vector<128x128xf32>
    %4 = tpu.matmul %0, %3, %cst_4 {dimension_numbers = #tpu.dot_dimension_numbers<[1], [0], [0], [1], [0, 0, 1, 1], [], []>} : vector<128x64xf32>, vector<64x128xf32>, vector<128x128xf32> -> vector<128x128xf32>
    %5 = vector.shape_cast %4 : vector<128x128xf32> to vector<8x16x128xf32>
    %6 = vector.extract_strided_slice %5 {offsets = [0, 0, 0], sizes = [8, 14, 128], strides = [1, 1, 1]} : vector<8x16x128xf32> to vector<8x14x128xf32>
    %7 = arith.addf %1, %6 : vector<8x14x128xf32>
    %c1 = arith.constant 1 : index
    %c0_5 = arith.constant 0 : index
    %c0_6 = arith.constant 0 : index
    %8 = vector.load %arg2[%c1, %c0_5, %c0_6] : memref<3x64x128xf32, #tpu.memory_space<vmem>>, vector<1x64x128xf32>
    %9 = vector.shape_cast %8 : vector<1x64x128xf32> to vector<64x128xf32>
    %cst_7 = arith.constant dense<0.000000e+00> : vector<128x128xf32>
    %10 = tpu.matmul %0, %9, %cst_7 {dimension_numbers = #tpu.dot_dimension_numbers<[1], [0], [0], [1], [0, 0, 1, 1], [], []>} : vector<128x64xf32>, vector<64x128xf32>, vector<128x128xf32> -> vector<128x128xf32>
    %11 = vector.shape_cast %10 : vector<128x128xf32> to vector<8x16x128xf32>
    %12 = vector.extract_strided_slice %11 {offsets = [0, 1, 0], sizes = [8, 14, 128], strides = [1, 1, 1]} : vector<8x16x128xf32> to vector<8x14x128xf32>
    %13 = arith.addf %7, %12 : vector<8x14x128xf32>
    %c2 = arith.constant 2 : index
    %c0_8 = arith.constant 0 : index
    %c0_9 = arith.constant 0 : index
    %14 = vector.load %arg2[%c2, %c0_8, %c0_9] : memref<3x64x128xf32, #tpu.memory_space<vmem>>, vector<1x64x128xf32>
    %15 = vector.shape_cast %14 : vector<1x64x128xf32> to vector<64x128xf32>
    %cst_10 = arith.constant dense<0.000000e+00> : vector<128x128xf32>
    %16 = tpu.matmul %0, %15, %cst_10 {dimension_numbers = #tpu.dot_dimension_numbers<[1], [0], [0], [1], [0, 0, 1, 1], [], []>} : vector<128x64xf32>, vector<64x128xf32>, vector<128x128xf32> -> vector<128x128xf32>
    %17 = vector.shape_cast %16 : vector<128x128xf32> to vector<8x16x128xf32>
    %18 = vector.extract_strided_slice %17 {offsets = [0, 2, 0], sizes = [8, 14, 128], strides = [1, 1, 1]} : vector<8x16x128xf32> to vector<8x14x128xf32>
    %19 = arith.addf %13, %18 : vector<8x14x128xf32>
    %c0_11 = arith.constant 0 : index
    %c0_12 = arith.constant 0 : index
    %20 = vector.load %arg3[%c0_11, %c0_12] : memref<1x128xf32, #tpu.memory_space<vmem>>, vector<1x128xf32>
    %21 = vector.shape_cast %20 : vector<1x128xf32> to vector<1x1x128xf32>
    %22 = vector.broadcast %21 : vector<1x1x128xf32> to vector<8x14x128xf32>
    %23 = arith.addf %19, %22 : vector<8x14x128xf32>
    %24 = vector.extract_strided_slice %23 {offsets = [0, 0, 0], sizes = [8, 14, 64], strides = [1, 1, 1]} : vector<8x14x128xf32> to vector<8x14x64xf32>
    %25 = vector.extract_strided_slice %23 {offsets = [0, 0, 64], sizes = [8, 14, 64], strides = [1, 1, 1]} : vector<8x14x128xf32> to vector<8x14x64xf32>
    %26 = arith.negf %25 : vector<8x14x64xf32>
    %27 = math.exp %26 : vector<8x14x64xf32>
    %cst_13 = arith.constant 1.000000e+00 : f32
    %28 = vector.broadcast %cst_13 : f32 to vector<8x14x64xf32>
    %29 = arith.addf %28, %27 : vector<8x14x64xf32>
    %30 = arith.divf %28, %29 : vector<8x14x64xf32>
    %31 = arith.addf %24, %30 : vector<8x14x64xf32>
    %cst_14 = arith.constant 0.000000e+00 : f32
    %32 = vector.broadcast %cst_14 : f32 to vector<8x14x64xf32>
    %33 = arith.maximumf %31, %32 : vector<8x14x64xf32>
    %c0_15 = arith.constant 0 : index
    %c0_16 = arith.constant 0 : index
    %c0_17 = arith.constant 0 : index
    %34 = vector.load %arg4[%c0_15, %c0_16, %c0_17] : memref<8x14x64xf32, #tpu.memory_space<vmem>>, vector<8x14x64xf32>
    tpu.vector_store %arg4[%c0_15, %c0_16, %c0_17], %33 {strides = array<i32>} : memref<8x14x64xf32, #tpu.memory_space<vmem>>, vector<8x14x64xf32>,
    return
  }
  func.func @transform_0(%arg0: i32) -> (i32, i32) {
    %c0_i32 = arith.constant 0 : i32
    %c0_i32_0 = arith.constant 0 : i32
    return %arg0, %c0_i32 : i32, i32
  }
  func.func @transform_1(%arg0: i32) -> (i32, i32, i32) {
    %c0_i32 = arith.constant 0 : i32
    %c0_i32_0 = arith.constant 0 : i32
    %c0_i32_1 = arith.constant 0 : i32
    %c0_i32_2 = arith.constant 0 : i32
    return %c0_i32, %c0_i32_0, %c0_i32_1 : i32, i32, i32
  }
  func.func @transform_2(%arg0: i32) -> (i32, i32) {
    %c0_i32 = arith.constant 0 : i32
    %c0_i32_0 = arith.constant 0 : i32
    %c0_i32_1 = arith.constant 0 : i32
    return %c0_i32, %c0_i32_0 : i32, i32
  }
  func.func @transform_3(%arg0: i32) -> (i32, i32, i32) {
    %c0_i32 = arith.constant 0 : i32
    %c0_i32_0 = arith.constant 0 : i32
    %c0_i32_1 = arith.constant 0 : i32
    return %arg0, %c0_i32, %c0_i32_0 : i32, i32, i32
  }
}

</mosaic_0001>

<bundles_post_ra>
// kernel: tpu_custom_call.1
= control target key start
LH: loop header
LB: loop body
LE: loop exit
PB: predicated region body
PF: predicated region fallthrough
CT: control target
= control target key end

     0   :  { %s1598_s12 = smov 0   ;;  %s1968_s0 = inlined_call_operand.vmem [shape: f32[256,64], index: 0, kind: input, shape index: {}]   ;;  %s1969_s1 = inlined_call_operand.vmem [shape: f32[3,64,128], index: 1, kind: input, shape index: {}]   ;;  %s1970_s2 = inlined_call_operand.vmem [shape: f32[1,128], index: 2, kind: input, shape index: {}]   ;;  %s1971_s3 = inlined_call_operand.vmem [shape: f32[16,14,64], index: 3, kind: output, shape index: {}]  }
   0x1 LB: > { %s1154_s13 = sadd.s32 4294967295, %s1575_s12   ;;  %p1158_p0 = scmp.ge.s32.totalorder %s1575_s12, 1  ;;  %s1575_s12 = sphi %s1598_s12, %s13_s12  }
   0x2   : > { %p138_p1 = scmp.lt.s32.totalorder %s1575_s12, 3 }
   0x4   : > { %p139_p2 = pnand %p1158_p0, %p138_p1 }
   0x5   : > { %v192_v0 = vld [vmem:[%s1969_s1] sm:$0xff] (!%p139_p2)  ;;  %v193_v1 = vld [vmem:[%s1969_s1 + $0x8] sm:$0xff] (!%p139_p2)  ;;  %v194_v2 = vld [vmem:[%s1969_s1 + $0x10] sm:$0xff] (!%p139_p2)  ;;  %s1159_s20 = sshll.u32 (!%p139_p2), %s1154_s13, 4  ;;  %vm200_vm0 = vcmask (!%p139_p2), 523264   ;;  %vm580_vm1 = vcmask (!%p139_p2), 1046528  }
   0x6   : > { %142 = sbr.rel (%p139_p2) target bundleno = 440 (0x1b8), region = 32  ;;  %v1440_v3 = vpack.c.bf16 (!%p139_p2), %v193_v1, %v192_v0  ;;  %v195_v4 = vld [vmem:[%s1969_s1 + $0x18] sm:$0xff] (!%p139_p2)  ;;  %p164_p3 = scmp.lt.s32.totalorder (!%p139_p2), %s1159_s20, 31  ;;  %v196_v6 = vld [vmem:[%s1969_s1 + $0x20] sm:$0xff] (!%p139_p2)  ;;  %v197_v7 = vld [vmem:[%s1969_s1 + $0x28] sm:$0xff] (!%p139_p2)  ;;  %vm807_vm2 = vcmask (!%p139_p2), 1045504  }
   0x7   : > { %v1444_v5 = vpack.c.bf16 (!%p139_p2), %v195_v4, %v194_v2  ;;  %v1448_v8 = vpack.c.bf16 (!%p139_p2), %v197_v7, %v196_v6  ;;  %v198_v9 = vld [vmem:[%s1969_s1 + $0x30] sm:$0xff] (!%p139_p2)  ;;  %v199_v10 = vld [vmem:[%s1969_s1 + $0x38] sm:$0xff] (!%p139_p2)  ;;  %v1180_v14 = vld [vmem:[%s1969_s1 + $0x40] sm:$0xff] (!%p139_p2)  ;;  %s1577_s19 = smov (!%p139_p2), 64   ;;  %vm1080_vm3 = vcmask (!%p139_p2), 521216  }
   0x8   : > { %1488 = vmatprep.subr.bf16.mxu1 (!%p139_p2), %v1440_v3  ;;  %1441 = vmatprep.subr.bf16.mxu0 (!%p139_p2), %v1440_v3  ;;  %v1452_v13 = vpack.c.bf16 (!%p139_p2), %v199_v10, %v198_v9  ;;  %v1181_v15 = vld [vmem:[%s1969_s1 + $0x48] sm:$0xff] (!%p139_p2)  ;;  %v1204_v16 = vld [vmem:[%s1969_s1 + $0x80] sm:$0xff] (!%p139_p2)  ;;  %v1182_v20 = vld [vmem:[%s1969_s1 + $0x50] sm:$0xff] (!%p139_p2) }
   0x9   : > { %1492 = vmatpush3.bf16.msra.mxu1 (!%p139_p2), %v1440_v3  ;;  %1443 = vmatpush3.bf16.msra.mxu0 (!%p139_p2), %v1440_v3  ;;  %v1205_v17 = vld [vmem:[%s1969_s1 + $0x88] sm:$0xff] (!%p139_p2)  ;;  %v1456_v18 = vpack.c.bf16 (!%p139_p2), %v1181_v15, %v1180_v14  ;;  %v1183_v21 = vld [vmem:[%s1969_s1 + $0x58] sm:$0xff] (!%p139_p2)  ;;  %v1206_v22 = vld [vmem:[%s1969_s1 + $0x90] sm:$0xff] (!%p139_p2) }
   0xa   : > { %1489 = vmatprep.subr.bf16.mxu1 (!%p139_p2), %v1444_v5  ;;  %1445 = vmatprep.subr.bf16.mxu0 (!%p139_p2), %v1444_v5  ;;  %v1472_v19 = vpack.c.bf16 (!%p139_p2), %v1205_v17, %v1204_v16  ;;  %v1207_v23 = vld [vmem:[%s1969_s1 + $0x98] sm:$0xff] (!%p139_p2)  ;;  %v1460_v27 = vpack.c.bf16 (!%p139_p2), %v1183_v21, %v1182_v20  ;;  %v1184_v29 = vld [vmem:[%s1969_s1 + $0x60] sm:$0xff] (!%p139_p2)  ;;  %v1185_v30 = vld [vmem:[%s1969_s1 + $0x68] sm:$0xff] (!%p139_p2) }
   0xb   : > { %v1476_v28 = vpack.c.bf16 (!%p139_p2), %v1207_v23, %v1206_v22  ;;  %v1208_v32 = vld [vmem:[%s1969_s1 + $0xa0] sm:$0xff] (!%p139_p2)  ;;  %v1209_v33 = vld [vmem:[%s1969_s1 + $0xa8] sm:$0xff] (!%p139_p2)  ;;  %v1464_v37 = vpack.c.bf16 (!%p139_p2), %v1185_v30, %v1184_v29  ;;  %v1186_v39 = vld [vmem:[%s1969_s1 + $0x70] sm:$0xff] (!%p139_p2) }
   0xc   : > { %v1480_v38 = vpack.c.bf16 (!%p139_p2), %v1209_v33, %v1208_v32  ;;  %v1187_v40 = vld [vmem:[%s1969_s1 + $0x78] sm:$0xff] (!%p139_p2)  ;;  %v1210_v42 = vld [vmem:[%s1969_s1 + $0xb0] sm:$0xff] (!%p139_p2)  ;;  %v1803_v14 = vld [vmem:[%s1970_s2] ss:$0 sm:$0xff] (!%p139_p2) }
   0xd   : > { %s1973_s20 = smov (!%p164_p3, %s1159_s20), 31  ;;  %1493 = vmatpush3.bf16.msra.mxu1 %v1444_v5  ;;  %1447 = vmatpush3.bf16.msra.mxu0 %v1444_v5  ;;  %v1211_v43 = vld [vmem:[%s1969_s1 + $0xb8] sm:$0xff]  ;;  %v1468_v47 = vpack.c.bf16 %v1187_v40, %v1186_v39 }
   0xe   : > { %s1160_s27 = sshll.u32 %s1973_s20, 3  ;;  %1490 = vmatprep.subr.bf16.mxu1 %v1448_v8  ;;  %1449 = vmatprep.subr.bf16.mxu0 %v1448_v8  ;;  %v1484_v48 = vpack.c.bf16 %v1211_v43, %v1210_v42  ;;  %s1161_s20 = sshll.u32 %s1154_s13, 3 }
   0xf   : > { %s1635_s7 = scalar_lea.vmem %s1968_s0, %s1160_s27  ;;  %p170_p4 = scmp.lt.s32.totalorder %s1161_s20, 15 }
  0x10   : > { %v1638_v11 = vld [vmem:[%s1635_s7 + $0x40] sm:$0xff]  ;;  %v1672_v24 = vld [vmem:[%s1635_s7 + $0x48] sm:$0xff]  ;;  %v1676_v26 = vld [vmem:[%s1635_s7 + $0x50] sm:$0xff] }
  0x11   : > { %v1641_v12 = vld [vmem:[%s1635_s7] sm:$0xff]  ;;  %1348 = vmatprep.mubr.msk.f32.mxu1 %vm200_vm0, %v1638_v11  ;;  %1494 = vmatpush3.bf16.msra.mxu1 %v1448_v8  ;;  %v177_v25 = vld [vmem:[%s1635_s7 + $0x8] sm:$0xff]  ;;  %v178_v31 = vld [vmem:[%s1635_s7 + $0x10] sm:$0xff]  ;;  %s1975_s20 = smov (!%p170_p4, %s1161_s20), 15 }
  0x12   : > { %1336 = vmatprep.mubr.msk.f32.mxu0 %vm200_vm0, %v1641_v12  ;;  %1451 = vmatpush3.bf16.msra.mxu0 %v1448_v8  ;;  %v1697_v34 = vld [vmem:[%s1635_s7 + $0x58] sm:$0xff]  ;;  %v1701_v36 = vld [vmem:[%s1635_s7 + $0x60] sm:$0xff]  ;;  %v189_v44 = vld [vmem:[%s1635_s7 + $0x68] sm:$0xff]  ;;  %s1247_s21 = sshll.u32 %s1975_s20, 4 }
  0x13   : > { %1491 = vmatprep.subr.bf16.mxu1 %v1452_v13  ;;  %1453 = vmatprep.subr.bf16.mxu0 %v1452_v13  ;;  %v179_v35 = vld [vmem:[%s1635_s7 + $0x18] sm:$0xff]  ;;  %v180_v41 = vld [vmem:[%s1635_s7 + $0x20] sm:$0xff]  ;;  %v181_v45 = vld [vmem:[%s1635_s7 + $0x28] sm:$0xff]  ;;  %s1916_s24 = scalar_lea.vmem %s1971_s3, %s1247_s21 }
  0x14   : > { %v190_v46 = vld [vmem:[%s1635_s7 + $0x70] sm:$0xff]  ;;  %v191_v50 = vld [vmem:[%s1635_s7 + $0x78] sm:$0xff] }
  0x15   : > { %1495 = vmatpush3.bf16.msra.mxu1 %v1452_v13  ;;  %v182_v49 = vld [vmem:[%s1635_s7 + $0x30] sm:$0xff]  ;;  %v183_v51 = vld [vmem:[%s1635_s7 + $0x38] sm:$0xff] }
  0x16   : > { %1455 = vmatpush3.bf16.msra.mxu0 %v1452_v13  ;;  %1457 = vmatprep.subr.bf16.mxu1 %v1456_v18 }
  0x17   : > { %1473 = vmatprep.subr.bf16.mxu0 %v1472_v19 }
  0x18   : > { %1349 = vmatmul.mubr.msk.f32.vlgmr.msra.gmra.mrb[0].mxu1 %vm200_vm0, %v1672_v24 }
  0x19   : > { %1337 = vmatmul.mubr.msk.f32.vlgmr.msra.gmra.mrb[0].mxu0 %vm200_vm0, %v177_v25  ;;  %1459 = vmatpush3.bf16.msra.mxu1 %v1456_v18 }
  0x1a   : > { %1351 = vmatprep.mubr.msk.f32.mxu1 %vm200_vm0, %v1676_v26  ;;  %1475 = vmatpush3.bf16.msra.mxu0 %v1472_v19 }
  0x1b   : > { %1461 = vmatprep.subr.bf16.mxu1 %v1460_v27  ;;  %1339 = vmatprep.mubr.msk.f32.mxu0 %vm200_vm0, %v178_v31 }
  0x1c   : > { %1477 = vmatprep.subr.bf16.mxu0 %v1476_v28  ;;  %1352 = vmatmul.mubr.msk.f32.gmra.mrb[2].mxu1 %vm200_vm0, %v1697_v34 }
  0x1d   : > { %1340 = vmatmul.mubr.msk.f32.gmra.mrb[2].mxu0 %vm200_vm0, %v179_v35  ;;  %1463 = vmatpush3.bf16.msra.mxu1 %v1460_v27 }
  0x1e   : > { %1354 = vmatprep.mubr.msk.f32.mxu1 %vm200_vm0, %v1701_v36  ;;  %1479 = vmatpush3.bf16.msra.mxu0 %v1476_v28 }
  0x1f   : > { %1465 = vmatprep.subr.bf16.mxu1 %v1464_v37  ;;  %1342 = vmatprep.mubr.msk.f32.mxu0 %vm200_vm0, %v180_v41 }
  0x20   : > { %1481 = vmatprep.subr.bf16.mxu0 %v1480_v38  ;;  %1355 = vmatmul.mubr.msk.f32.gmra.mrb[4].mxu1 %vm200_vm0, %v189_v44 }
  0x21   : > { %1343 = vmatmul.mubr.msk.f32.gmra.mrb[4].mxu0 %vm200_vm0, %v181_v45  ;;  %1467 = vmatpush3.bf16.msra.mxu1 %v1464_v37 }
  0x22   : > { %1357 = vmatprep.mubr.msk.f32.mxu1 %vm200_vm0, %v190_v46  ;;  %1483 = vmatpush3.bf16.msra.mxu0 %v1480_v38 }
  0x23   : > { %1469 = vmatprep.subr.bf16.mxu1 %v1468_v47  ;;  %1345 = vmatprep.mubr.msk.f32.mxu0 %vm200_vm0, %v182_v49 }
  0x24   : > { %1485 = vmatprep.subr.bf16.mxu0 %v1484_v48  ;;  %1358 = vmatmul.mubr.msk.f32.gmra.mrb[6].mxu1 %vm200_vm0, %v191_v50 }
  0x25   : > { %1346 = vmatmul.mubr.msk.f32.gmra.mrb[6].mxu0 %vm200_vm0, %v183_v51  ;;  %1471 = vmatpush3.bf16.msra.mxu1 %v1468_v47 }
  0x26   : > { %1376 = vmatprep.mubr.msk.f32.mxu1 %vm200_vm0, %v1641_v12  ;;  %1487 = vmatpush3.bf16.msra.mxu0 %v1484_v48 }
  0x27   : > { %1416 = vmatprep.mubr.msk.f32.mxu0 %vm200_vm0, %v1641_v12 }
  0x28   : > { %1377 = vmatmul.mubr.msk.f32.vlgmr.msra.gmra.mrb[8].mxu1 %vm200_vm0, %v177_v25 }
  0x29   : > { %1417 = vmatmul.mubr.msk.f32.vlgmr.msra.gmra.mrb[8].mxu0 %vm200_vm0, %v177_v25  ;;  %1379 = vmatprep.mubr.msk.f32.mxu1 %vm200_vm0, %v178_v31 }
  0x2a   : > { %1419 = vmatprep.mubr.msk.f32.mxu0 %vm200_vm0, %v178_v31 }
  0x2c   : > { %1380 = vmatmul.mubr.msk.f32.gmra.mrb[10].mxu1 %vm200_vm0, %v179_v35 }
  0x2d   : > { %1420 = vmatmul.mubr.msk.f32.gmra.mrb[10].mxu0 %vm200_vm0, %v179_v35  ;;  %1382 = vmatprep.mubr.msk.f32.mxu1 %vm200_vm0, %v180_v41 }
  0x2e   : > { %1422 = vmatprep.mubr.msk.f32.mxu0 %vm200_vm0, %v180_v41 }
  0x30   : > { %1383 = vmatmul.mubr.msk.f32.gmra.mrb[12].mxu1 %vm200_vm0, %v181_v45 }
  0x31   : > { %1423 = vmatmul.mubr.msk.f32.gmra.mrb[12].mxu0 %vm200_vm0, %v181_v45  ;;  %1385 = vmatprep.mubr.msk.f32.mxu1 %vm200_vm0, %v182_v49 }
  0x32   : > { %1425 = vmatprep.mubr.msk.f32.mxu0 %vm200_vm0, %v182_v49 }
  0x34   : > { %1386 = vmatmul.mubr.msk.f32.gmra.mrb[14].mxu1 %vm200_vm0, %v183_v51 }
  0x35   : > { %1426 = vmatmul.mubr.msk.f32.gmra.mrb[14].mxu0 %vm200_vm0, %v183_v51  ;;  %1388 = vmatprep.mubr.msk.f32.mxu1 %vm200_vm0, %v1638_v11 }
  0x36   : > { %1428 = vmatprep.mubr.msk.f32.mxu0 %vm200_vm0, %v1638_v11 }
  0x38   : > { %1389 = vmatmul.mubr.msk.f32.gmra.mrb[16].mxu1 %vm200_vm0, %v1672_v24 }
  0x39   : > { %1429 = vmatmul.mubr.msk.f32.gmra.mrb[16].mxu0 %vm200_vm0, %v1672_v24  ;;  %1391 = vmatprep.mubr.msk.f32.mxu1 %vm200_vm0, %v1676_v26 }
  0x3a   : > { %1431 = vmatprep.mubr.msk.f32.mxu0 %vm200_vm0, %v1676_v26 }
  0x3c   : > { %1392 = vmatmul.mubr.msk.f32.gmra.mrb[18].mxu1 %vm200_vm0, %v1697_v34 }
  0x3d   : > { %1432 = vmatmul.mubr.msk.f32.gmra.mrb[18].mxu0 %vm200_vm0, %v1697_v34  ;;  %1394 = vmatprep.mubr.msk.f32.mxu1 %vm200_vm0, %v1701_v36 }
  0x3e   : > { %1434 = vmatprep.mubr.msk.f32.mxu0 %vm200_vm0, %v1701_v36 }
  0x40   : > { %1395 = vmatmul.mubr.msk.f32.gmra.mrb[20].mxu1 %vm200_vm0, %v189_v44 }
  0x41   : > { %1435 = vmatmul.mubr.msk.f32.gmra.mrb[20].mxu0 %vm200_vm0, %v189_v44  ;;  %1397 = vmatprep.mubr.msk.f32.mxu1 %vm200_vm0, %v190_v46 }
  0x42   : > { %1437 = vmatprep.mubr.msk.f32.mxu0 %vm200_vm0, %v190_v46 }
  0x44   : > { %1398 = vmatmul.mubr.msk.f32.gmra.mrb[22].mxu1 %vm200_vm0, %v191_v50 }
  0x45   : > { %1438 = vmatmul.mubr.msk.f32.gmra.mrb[22].mxu0 %vm200_vm0, %v191_v50 }
  0xeb   : > { %v1779_v52 = vpop.f32.mrb[0].mxu1 }
  0xec   : > { %v1338_v53 = vpop.f32.mrb[0].mxu0  ;;  %v1781_v54 = vpop.f32.mrb[1].mxu1 }
  0xed   : > { %v315_v55 = vpop.f32.mrb[1].mxu0 }
  0xef   : > { %v1783_v56 = vpop.f32.mrb[2].mxu1 }
  0xf0   : > { %v1341_v57 = vpop.f32.mrb[2].mxu0  ;;  %v1785_v58 = vpop.f32.mrb[3].mxu1 }
  0xf1   : > { %v325_v59 = vpop.f32.mrb[3].mxu0 }
  0xf3   : > { %v1787_v60 = vpop.f32.mrb[4].mxu1 }
  0xf4   : > { %v1344_v61 = vpop.f32.mrb[4].mxu0  ;;  %v1789_v62 = vpop.f32.mrb[5].mxu1 }
  0xf5   : > { %v335_v63 = vpop.f32.mrb[5].mxu0 }
  0xf7   : > { %v1791_v0 = vpop.f32.mrb[6].mxu1 }
  0xf8   : > { %v1793_v1 = vpop.f32.mrb[6].mxu0  ;;  %v1795_v2 = vpop.f32.mrb[7].mxu1 }
  0xf9   : > { %v1797_v3 = vpop.f32.mrb[7].mxu0 }
  0xfb   : > { %v1378_v4 = vpop.f32.mrb[8].mxu1 }
  0xfc   : > { %v582_v5 = vrot.slane %v1378_v4, 1  ;;  %v485_v6 = vpop.f32.mrb[9].mxu1  ;;  %v1418_v7 = vpop.f32.mrb[8].mxu0 }
  0xfd   : > { %v581_v8 = vrot.slane %v485_v6, 1  ;;  %v809_v9 = vrot.slane %v1418_v7, 2  ;;  %v712_v10 = vpop.f32.mrb[9].mxu0 }
  0xfe   : > { %v622_v11 = vadd.f32 %v1338_v53, %v582_v5  ;;  %v808_v12 = vrot.slane %v712_v10, 2 }
  0xff   : > { %v583_v13 = vsel %vm580_vm1, %v581_v8, %v582_v5  ;;  %v1381_v15 = vpop.f32.mrb[10].mxu1 }
 0x100   : > { %v621_v16 = vadd.f32 %v583_v13, %v315_v55  ;;  %v849_v17 = vadd.f32 %v809_v9, %v622_v11  ;;  %v810_v18 = vsel %vm807_vm2, %v808_v12, %v809_v9  ;;  %v585_v19 = vrot.slane %v1381_v15, 1  ;;  %v495_v20 = vpop.f32.mrb[11].mxu1  ;;  %v1421_v21 = vpop.f32.mrb[10].mxu0 }
 0x101   : > { %v584_v22 = vrot.slane %v495_v20, 1  ;;  %v812_v23 = vrot.slane %v1421_v21, 2  ;;  %v722_v24 = vpop.f32.mrb[11].mxu0 }
 0x102   : > { %v1807_v25 = vadd.f32 %v1803_v14, %v849_v17  ;;  %v848_v26 = vadd.f32 %v810_v18, %v621_v16  ;;  %v624_v27 = vadd.f32 %v1341_v57, %v585_v19  ;;  %v811_v28 = vrot.slane %v722_v24, 2 }
 0x103   : > { %v586_v29 = vsel %vm580_vm1, %v584_v22, %v585_v19  ;;  %v1384_v30 = vpop.f32.mrb[12].mxu1 }
 0x104   : > { %v1230_v31 = vmul.f32 -1.442695, %v1807_v25  ;;  %v1812_v32 = vadd.f32 %v1803_v14, %v848_v26  ;;  %v623_v33 = vadd.f32 %v586_v29, %v325_v59  ;;  %v851_v34 = vadd.f32 %v812_v23, %v624_v27  ;;  %v505_v35 = vpop.f32.mrb[13].mxu1  ;;  %v1424_v36 = vpop.f32.mrb[12].mxu0 }
 0x105   : > { %v813_v37 = vsel %vm807_vm2, %v811_v28, %v812_v23  ;;  %v588_v38 = vrot.slane %v1384_v30, 1  ;;  %v587_v39 = vrot.slane %v505_v35, 1  ;;  %v815_v40 = vrot.slane %v1424_v36, 2  ;;  %v732_v41 = vpop.f32.mrb[13].mxu0 }
 0x106   : > { %1505 = vpow2.f32 %v1230_v31  ;;  %v1229_v42 = vmul.f32 -1.442695, %v1812_v32  ;;  %v1817_v43 = vadd.f32 %v1803_v14, %v851_v34  ;;  %v850_v44 = vadd.f32 %v813_v37, %v623_v33 }
 0x107   : > { %v626_v45 = vadd.f32 %v1344_v61, %v588_v38  ;;  %v589_v46 = vsel %vm580_vm1, %v587_v39, %v588_v38  ;;  %v814_v47 = vrot.slane %v732_v41, 2  ;;  %v1387_v48 = vpop.f32.mrb[14].mxu1 }
 0x108   : > { %1507 = vpow2.f32 %v1229_v42  ;;  %v1232_v49 = vmul.f32 -1.442695, %v1817_v43  ;;  %v1822_v50 = vadd.f32 %v1803_v14, %v850_v44  ;;  %v625_v51 = vadd.f32 %v589_v46, %v335_v63  ;;  %v515_v53 = vpop.f32.mrb[15].mxu1  ;;  %v1427_v55 = vpop.f32.mrb[14].mxu0 }
 0x109   : > { %v853_v57 = vadd.f32 %v815_v40, %v626_v45  ;;  %v816_v59 = vsel %vm807_vm2, %v814_v47, %v815_v40  ;;  %v591_v4 = vrot.slane %v1387_v48, 1  ;;  %v590_v5 = vrot.slane %v515_v53, 1  ;;  %v742_v6 = vpop.f32.mrb[15].mxu0 }
 0x10a   : > { %1509 = vpow2.f32 %v1232_v49  ;;  %v1231_v61 = vmul.f32 -1.442695, %v1822_v50  ;;  %v852_v7 = vadd.f32 %v816_v59, %v625_v51  ;;  %v818_v8 = vrot.slane %v1427_v55, 2 }
 0x10b   : > { %v1827_v9 = vadd.f32 %v1803_v14, %v853_v57  ;;  %v628_v10 = vadd.f32 %v1793_v1, %v591_v4  ;;  %v592_v63 = vsel %vm580_vm1, %v590_v5, %v591_v4  ;;  %v817_v11 = vrot.slane %v742_v6, 2  ;;  %v1390_v12 = vpop.f32.mrb[16].mxu1 }
 0x10c   : > { %1511 = vpow2.f32 %v1231_v61  ;;  %v1832_v13 = vadd.f32 %v1803_v14, %v852_v7  ;;  %v627_v15 = vadd.f32 %v592_v63, %v1797_v3  ;;  %v594_v16 = vrot.slane %v1390_v12, 1  ;;  %v525_v17 = vpop.f32.mrb[17].mxu1  ;;  %v1430_v18 = vpop.f32.mrb[16].mxu0 }
 0x10d   : > { %v1234_v19 = vmul.f32 -1.442695, %v1827_v9  ;;  %v855_v20 = vadd.f32 %v818_v8, %v628_v10  ;;  %v819_v21 = vsel %vm807_vm2, %v817_v11, %v818_v8  ;;  %v593_v22 = vrot.slane %v525_v17, 1  ;;  %v752_v1 = vpop.f32.mrb[17].mxu0 }
 0x10e   : > { %v1233_v23 = vmul.f32 -1.442695, %v1832_v13  ;;  %v854_v24 = vadd.f32 %v819_v21, %v627_v15  ;;  %v630_v26 = vadd.f32 %v1779_v52, %v594_v16  ;;  %v821_v27 = vrot.slane %v1430_v18, 2 }
 0x10f   : > { %1513 = vpow2.f32 %v1234_v19  ;;  %v1840_v28 = vadd.f32 %v1803_v14, %v855_v20  ;;  %v595_v3 = vsel %vm580_vm1, %v593_v22, %v594_v16  ;;  %v820_v29 = vrot.slane %v752_v1, 2  ;;  %v1393_v30 = vpop.f32.mrb[18].mxu1 }
 0x110   : > { %v1506_v31 = vpop.eup %1505  ;;  %1515 = vpow2.f32 %v1233_v23  ;;  %v1844_v33 = vadd.f32 %v1803_v14, %v854_v24  ;;  %v629_v34 = vadd.f32 %v595_v3, %v1781_v54  ;;  %v857_v35 = vadd.f32 %v821_v27, %v630_v26  ;;  %v535_v36 = vpop.f32.mrb[19].mxu1 }
 0x111   : > { %v1433_v37 = vpop.f32.mrb[18].mxu0  ;;  %v936_v52 = vadd.f32 1.0, %v1506_v31  ;;  %v1236_v38 = vmul.f32 -1.442695, %v1840_v28  ;;  %v822_v39 = vsel %vm807_vm2, %v820_v29, %v821_v27  ;;  %v597_v40 = vrot.slane %v1393_v30, 1 }
 0x112   : > { %v762_v41 = vpop.f32.mrb[19].mxu0  ;;  %v1508_v42 = vpop.eup %1507  ;;  %v1235_v44 = vmul.f32 -1.442695, %v1844_v33  ;;  %v1851_v45 = vadd.f32 %v1803_v14, %v857_v35  ;;  %v856_v46 = vadd.f32 %v822_v39, %v629_v34  ;;  %v596_v47 = vrot.slane %v535_v36, 1 }
 0x113   : > { %1517 = vrcp.f32 %v936_v52  ;;  %v935_v54 = vadd.f32 1.0, %v1508_v42  ;;  %v632_v48 = vadd.f32 %v1783_v56, %v597_v40  ;;  %v824_v49 = vrot.slane %v1433_v37, 2  ;;  %v1396_v51 = vpop.f32.mrb[20].mxu1 }
 0x114   : > { %v1510_v53 = vpop.eup %1509  ;;  %1519 = vpow2.f32 %v1236_v38  ;;  %v1238_v55 = vmul.f32 -1.442695, %v1851_v45  ;;  %v1856_v57 = vadd.f32 %v1803_v14, %v856_v46  ;;  %v598_v59 = vsel %vm580_vm1, %v596_v47, %v597_v40  ;;  %v545_v4 = vpop.f32.mrb[21].mxu1 }
 0x115   : > { %v1436_v5 = vpop.f32.mrb[20].mxu0  ;;  %1521 = vrcp.f32 %v935_v54  ;;  %v938_v6 = vadd.f32 1.0, %v1510_v53  ;;  %v631_v61 = vadd.f32 %v598_v59, %v1785_v58  ;;  %v859_v7 = vadd.f32 %v824_v49, %v632_v48 }
 0x116   : > { %v772_v8 = vpop.f32.mrb[21].mxu0  ;;  %v1512_v56 = vpop.eup %1511  ;;  %1523 = vpow2.f32 %v1235_v44  ;;  %v1237_v10 = vmul.f32 -1.442695, %v1856_v57  ;;  %v823_v63 = vrot.slane %v762_v41, 2  ;;  %v600_v11 = vrot.slane %v1396_v51, 1 }
 0x117   : > { %1525 = vrcp.f32 %v938_v6  ;;  %v937_v12 = vadd.f32 1.0, %v1512_v56  ;;  %v1862_v15 = vadd.f32 %v1803_v14, %v859_v7  ;;  %v599_v16 = vrot.slane %v545_v4, 1  ;;  %v1399_v17 = vpop.f32.mrb[22].mxu1 }
 0x118   : > { %1527 = vpow2.f32 %v1238_v55  ;;  %v825_v18 = vsel %vm807_vm2, %v823_v63, %v824_v49  ;;  %v634_v58 = vadd.f32 %v1787_v60, %v600_v11  ;;  %v827_v19 = vrot.slane %v1436_v5, 2  ;;  %v555_v20 = vpop.f32.mrb[23].mxu1  ;;  %v1439_v21 = vpop.f32.mrb[22].mxu0 }
 0x119   : > { %v1514_v22 = vpop.eup %1513  ;;  %1529 = vrcp.f32 %v937_v12  ;;  %v1240_v1 = vmul.f32 -1.442695, %v1862_v15  ;;  %v858_v23 = vadd.f32 %v825_v18, %v631_v61  ;;  %v601_v24 = vsel %vm580_vm1, %v599_v16, %v600_v11  ;;  %v782_v26 = vpop.f32.mrb[23].mxu0 }
 0x11a   : > { %v1516_v27 = vpop.eup %1515  ;;  %v940_v3 = vadd.f32 1.0, %v1514_v22  ;;  %1531 = vpow2.f32 %v1237_v10  ;;  %v633_v29 = vadd.f32 %v601_v24, %v1789_v62  ;;  %v861_v30 = vadd.f32 %v827_v19, %v634_v58 }
 0x11b   : > { %v939_v31 = vadd.f32 1.0, %v1516_v27  ;;  %1533 = vpow2.f32 %v1240_v1  ;;  %v1870_v60 = vadd.f32 %v1803_v14, %v858_v23  ;;  %v826_v34 = vrot.slane %v772_v8, 2 }
 0x11c   : > { %1535 = vrcp.f32 %v940_v3  ;;  %v1873_v35 = vadd.f32 %v1803_v14, %v861_v30  ;;  %v603_v36 = vrot.slane %v1399_v17, 1  ;;  %v602_v37 = vrot.slane %v555_v20, 1 }
 0x11d   : > { %v1518_v52 = vpop.eup %1517  ;;  %1537 = vrcp.f32 %v939_v31  ;;  %v1239_v38 = vmul.f32 -1.442695, %v1870_v60  ;;  %v828_v39 = vsel %vm807_vm2, %v826_v34, %v827_v19  ;;  %v830_v62 = vrot.slane %v1439_v21, 2 }
 0x11e   : > { %v1520_v40 = vpop.eup %1519  ;;  %v1242_v41 = vmul.f32 -1.442695, %v1873_v35  ;;  %v860_v42 = vadd.f32 %v828_v39, %v633_v29  ;;  %v636_v44 = vadd.f32 %v1791_v0, %v603_v36  ;;  %v604_v46 = vsel %vm580_vm1, %v602_v37, %v603_v36  ;;  %1001 = vrot.lane.b32.xlu0 %v1518_v52, %s1577_s19 }
 0x11f   : > { %v1522_v47 = vpop.eup %1521  ;;  %v942_v54 = vadd.f32 1.0, %v1520_v40  ;;  %1539 = vpow2.f32 %v1239_v38  ;;  %v635_v48 = vadd.f32 %v604_v46, %v1795_v2  ;;  %v829_v49 = vrot.slane %v782_v26, 2 }
 0x120   : > { %v1524_v51 = vpop.eup %1523  ;;  %1541 = vpow2.f32 %v1242_v41  ;;  %v1883_v53 = vadd.f32 %v1803_v14, %v860_v42  ;;  %v863_v55 = vadd.f32 %v830_v62, %v636_v44 }
 0x121   : > { %v1526_v59 = vpop.eup %1525  ;;  %v941_v4 = vadd.f32 1.0, %v1524_v51  ;;  %v831_v0 = vsel %vm807_vm2, %v829_v49, %v830_v62  ;;  %1543 = vrcp.f32 %v942_v54 }
 0x122   : > { %v1528_v5 = vpop.eup %1527  ;;  %v1241_v6 = vmul.f32 -1.442695, %v1883_v53  ;;  %v1888_v61 = vadd.f32 %v1803_v14, %v863_v55  ;;  %v862_v7 = vadd.f32 %v831_v0, %v635_v48  ;;  %999 = vrot.lane.b32.xlu0 %v1522_v47, %s1577_s19  ;;  %1005 = vrot.lane.b32.xlu1 %v1526_v59, %s1577_s19 }
 0x123   : > { %v1530_v2 = vpop.eup %1529  ;;  %1545 = vrcp.f32 %v941_v4  ;;  %v944_v8 = vadd.f32 1.0, %v1528_v5 }
 0x124   : > { %v1532_v56 = vpop.eup %1531  ;;  %1547 = vpow2.f32 %v1241_v6  ;;  %v1244_v10 = vmul.f32 -1.442695, %v1888_v61  ;;  %v1894_v63 = vadd.f32 %v1803_v14, %v862_v7 }
 0x125   : > { %v1534_v11 = vpop.eup %1533  ;;  %1549 = vrcp.f32 %v944_v8  ;;  %v943_v12 = vadd.f32 1.0, %v1532_v56 }
 0x126   : > { %v1536_v16 = vpop.eup %1535  ;;  %1551 = vpow2.f32 %v1244_v10  ;;  %v1243_v17 = vmul.f32 -1.442695, %v1894_v63  ;;  %1003 = vrot.lane.b32.xlu1 %v1530_v2, %s1577_s19  ;;  %v946_v58 = vadd.f32 1.0, %v1534_v11 }
 0x127   : > { %v1538_v18 = vpop.eup %1537  ;;  %1553 = vrcp.f32 %v943_v12 }
 0x128   : > { %1007 = vrot.lane.b32.xlu0 %v1538_v18, %s1577_s19  ;;  %1555 = vpow2.f32 %v1243_v17 }
 0x129   : > { %v1540_v19 = vpop.eup %1539  ;;  %1557 = vrcp.f32 %v946_v58 }
 0x12a   : > { %v1542_v20 = vpop.eup %1541  ;;  %v945_v21 = vadd.f32 1.0, %v1540_v19  ;;  %1009 = vrot.lane.b32.xlu1 %v1536_v16, %s1577_s19 }
 0x12b   : > { %v948_v14 = vadd.f32 1.0, %v1542_v20  ;;  %v1544_v22 = vpop.eup %1543 }
 0x12c   : > { %1559 = vrcp.f32 %v945_v21 }
 0x12d   : > { %v1546_v1 = vpop.eup %1545  ;;  %1561 = vrcp.f32 %v948_v14 }
 0x12e   : > { %v1548_v23 = vpop.eup %1547  ;;  %1011 = vrot.lane.b32.xlu0 %v1546_v1, %s1577_s19  ;;  %1013 = vrot.lane.b32.xlu1 %v1544_v22, %s1577_s19 }
 0x12f   : > { %v1550_v24 = vpop.eup %1549  ;;  %v947_v26 = vadd.f32 1.0, %v1548_v23 }
 0x130   : > { %v1552_v27 = vpop.eup %1551 }
 0x131   : > { %v1554_v3 = vpop.eup %1553  ;;  %1563 = vrcp.f32 %v947_v26  ;;  %v950_v29 = vadd.f32 1.0, %v1552_v27 }
 0x132   : > { %1015 = vrot.lane.b32.xlu0 %v1554_v3, %s1577_s19  ;;  %1017 = vrot.lane.b32.xlu1 %v1550_v24, %s1577_s19  ;;  %v1556_v30 = vpop.eup %1555 }
 0x133   : > { %1565 = vrcp.f32 %v950_v29  ;;  %v949_v31 = vadd.f32 1.0, %v1556_v30  ;;  %v1558_v34 = vpop.eup %1557 }
 0x135   : > { %1567 = vrcp.f32 %v949_v31 }
 0x136   : > { %v1560_v36 = vpop.eup %1559  ;;  %1021 = vrot.lane.b32.xlu1 %v1558_v34, %s1577_s19 }
 0x137   : > { %1019 = vrot.lane.b32.xlu0 %v1560_v36, %s1577_s19  ;;  %v1562_v37 = vpop.eup %1561 }
 0x13a   : > { %1025 = vrot.lane.b32.xlu1 %v1562_v37, %s1577_s19 }
 0x13b   : > { %v1564_v52 = vpop.eup %1563 }
 0x13c   : > { %1023 = vrot.lane.b32.xlu0 %v1564_v52, %s1577_s19 }
 0x13d   : > { %v1566_v38 = vpop.eup %1565 }
 0x13e   : > { %1029 = vrot.lane.b32.xlu1 %v1566_v38, %s1577_s19 }
 0x13f   : > { %v1568_v39 = vpop.eup %1567 }
 0x140   : > { %1027 = vrot.lane.b32.xlu0 %v1568_v39, %s1577_s19 }
 0x190   : > { %v1002_v62 = vpop.permute.xlu0 %1001 }
 0x191   : > { %v1048_v40 = vadd.f32 %v1002_v62, %v1807_v25 }
 0x193   : > { %v1064_v41 = vmax.f32 %v1048_v40, 0.0 }
 0x194   : > { %v1000_v42 = vpop.permute.xlu0 %999  ;;  %v1006_v44 = vpop.permute.xlu1 %1005 }
 0x195   : > { %1081 = vst.msk [vmem:[%s1916_s24 + $0x8] sm:$0x3f] %vm1080_vm3, %v1064_v41  ;;  %v1047_v46 = vadd.f32 %v1000_v42, %v1812_v32  ;;  %v1050_v25 = vadd.f32 %v1006_v44, %v1817_v43 }
 0x197   : > { %v1063_v47 = vmax.f32 %v1047_v46, 0.0  ;;  %v1066_v54 = vmax.f32 %v1050_v25, 0.0 }
 0x198   : > { %v1004_v48 = vpop.permute.xlu1 %1003 }
 0x199   : > { %1079 = vst.msk [vmem:[%s1916_s24] sm:$0xff] %vm200_vm0, %v1063_v47  ;;  %v1049_v49 = vadd.f32 %v1004_v48, %v1822_v50 }
 0x19a   : > { %1083 = vst.msk [vmem:[%s1916_s24 + $0x18] sm:$0x3f] %vm1080_vm3, %v1066_v54  ;;  %v1008_v51 = vpop.permute.xlu0 %1007 }
 0x19b   : > { %v1065_v55 = vmax.f32 %v1049_v49, 0.0  ;;  %v1051_v59 = vadd.f32 %v1008_v51, %v1832_v13 }
 0x19c   : > { %v1010_v4 = vpop.permute.xlu1 %1009 }
 0x19d   : > { %1082 = vst.msk [vmem:[%s1916_s24 + $0x10] sm:$0xff] %vm200_vm0, %v1065_v55  ;;  %v1067_v32 = vmax.f32 %v1051_v59, 0.0  ;;  %v1052_v43 = vadd.f32 %v1010_v4, %v1827_v9 }
 0x19f   : > { %1084 = vst.msk [vmem:[%s1916_s24 + $0x20] sm:$0xff] %vm200_vm0, %v1067_v32  ;;  %v1068_v0 = vmax.f32 %v1052_v43, 0.0 }
 0x1a0   : > { %v1012_v5 = vpop.permute.xlu0 %1011  ;;  %v1014_v6 = vpop.permute.xlu1 %1013 }
 0x1a1   : > { %1085 = vst.msk [vmem:[%s1916_s24 + $0x28] sm:$0x3f] %vm1080_vm3, %v1068_v0  ;;  %v1053_v50 = vadd.f32 %v1012_v5, %v1844_v33  ;;  %v1054_v13 = vadd.f32 %v1014_v6, %v1840_v28 }
 0x1a3   : > { %v1069_v7 = vmax.f32 %v1053_v50, 0.0  ;;  %v1070_v2 = vmax.f32 %v1054_v13, 0.0 }
 0x1a4   : > { %v1016_v8 = vpop.permute.xlu0 %1015  ;;  %v1018_v56 = vpop.permute.xlu1 %1017 }
 0x1a5   : > { %1086 = vst.msk [vmem:[%s1916_s24 + $0x30] sm:$0xff] %vm200_vm0, %v1069_v7  ;;  %v1055_v9 = vadd.f32 %v1016_v8, %v1856_v57  ;;  %v1056_v10 = vadd.f32 %v1018_v56, %v1851_v45 }
 0x1a6   : > { %1087 = vst.msk [vmem:[%s1916_s24 + $0x38] sm:$0x3f] %vm1080_vm3, %v1070_v2 }
 0x1a7   : > { %v1071_v11 = vmax.f32 %v1055_v9, 0.0  ;;  %v1072_v12 = vmax.f32 %v1056_v10, 0.0 }
 0x1a8   : > { %v1022_v16 = vpop.permute.xlu1 %1021 }
 0x1a9   : > { %1088 = vst.msk [vmem:[%s1916_s24 + $0x40] sm:$0xff] %vm200_vm0, %v1071_v11  ;;  %v1020_v28 = vpop.permute.xlu0 %1019  ;;  %v1058_v33 = vadd.f32 %v1022_v16, %v1862_v15 }
 0x1aa   : > { %1089 = vst.msk [vmem:[%s1916_s24 + $0x48] sm:$0x3f] %vm1080_vm3, %v1072_v12  ;;  %v1057_v17 = vadd.f32 %v1020_v28, %v1870_v60 }
 0x1ab   : > { %v1074_v18 = vmax.f32 %v1058_v33, 0.0 }
 0x1ac   : > { %v1073_v58 = vmax.f32 %v1057_v17, 0.0  ;;  %v1026_v57 = vpop.permute.xlu1 %1025 }
 0x1ad   : > { %1091 = vst.msk [vmem:[%s1916_s24 + $0x58] sm:$0x3f] %vm1080_vm3, %v1074_v18  ;;  %v1060_v45 = vadd.f32 %v1026_v57, %v1873_v35 }
 0x1ae   : > { %1090 = vst.msk [vmem:[%s1916_s24 + $0x50] sm:$0xff] %vm200_vm0, %v1073_v58  ;;  %v1024_v19 = vpop.permute.xlu0 %1023 }
 0x1af   : > { %v1059_v20 = vadd.f32 %v1024_v19, %v1883_v53  ;;  %v1076_v21 = vmax.f32 %v1060_v45, 0.0 }
 0x1b0   : > { %v1030_v14 = vpop.permute.xlu1 %1029 }
 0x1b1   : > { %v1075_v22 = vmax.f32 %v1059_v20, 0.0  ;;  %1093 = vst.msk [vmem:[%s1916_s24 + $0x68] sm:$0x3f] %vm1080_vm3, %v1076_v21  ;;  %v1062_v15 = vadd.f32 %v1030_v14, %v1888_v61 }
 0x1b2   : > { %v1028_v60 = vpop.permute.xlu0 %1027 }
 0x1b3   : > { %1092 = vst.msk [vmem:[%s1916_s24 + $0x60] sm:$0xff] %vm200_vm0, %v1075_v22  ;;  %v1078_v1 = vmax.f32 %v1062_v15, 0.0  ;;  %v1061_v23 = vadd.f32 %v1028_v60, %v1894_v63 }
 0x1b5   : > { %1095 = vst.msk [vmem:[%s1916_s24 + $0x78] sm:$0x3f] %vm1080_vm3, %v1078_v1  ;;  %v1077_v35 = vmax.f32 %v1061_v23, 0.0 }
 0x1b7   : > { %1094 = vst.msk [vmem:[%s1916_s24 + $0x70] sm:$0xff] %vm200_vm0, %v1077_v35 }
 0x1b8 PF: > { %s13_s12 = sadd.s32 1, %s1575_s12  }
 0x1b9   : > { %p10_p5 = scmp.ge.s32.totalorder %s13_s12, 4  }
 0x1bb   :  { %12 = sbr.rel (!%p10_p5) target bundleno = 1 (0x1), region = 64 }

</bundles_post_ra>
